<compile_context>
chip_gen: v5e
topology: v5e:2x2
jax: 0.10.0
libtpu: 0.0.40
codegen_flags: <defaults>
</compile_context>

<pallas_src>
import functools

import jax
import jax.numpy as jnp
from jax.experimental import pallas as pl
from jax.experimental.pallas import tpu as pltpu

_VMEM_LIMIT_BYTES = 32 * 1024 * 1024   # safe on v5e/v6e (128 MiB) and v7x (64 MiB)
_VMEM_TILE_BUDGET = 24 * 1024 * 1024   # conservative budget for the pipelined tiles


def _gemm_bn_relu_kernel(wt_ref, at_ref, bias_ref, o_ref):
    # wt_ref:   (OUTp, K)  bf16  -- conv weights with BN scale folded in (VMEM-resident)
    # at_ref:   (K, TM)    bf16  -- transposed im2col patch tile (streamed over M)
    # bias_ref: (OUTp, 1)  f32   -- folded BN bias (VMEM-resident)
    # o_ref:    (OUTp, TM) f32   -- lane-dense output tile
    acc = jnp.dot(wt_ref[...], at_ref[...], preferred_element_type=jnp.float32)
    o_ref[...] = jnp.maximum(acc + bias_ref[...], 0.0).astype(o_ref.dtype)


def _im2col_t(x, kh, kw, stride, padding, dilation):
    """x: (N, C, H, W) -> A^T of shape (C*KH*KW, N*OH*OW), plus (OH, OW)."""
    n, c, h, w = x.shape
    oh = (h + 2 * padding - dilation * (kh - 1) - 1) // stride + 1
    ow = (w + 2 * padding - dilation * (kw - 1) - 1) // stride + 1
    xp = jnp.pad(x, ((0, 0), (0, 0), (padding, padding), (padding, padding)))
    cols = []
    for i in range(kh):
        for j in range(kw):
            hs = i * dilation
            ws = j * dilation
            cols.append(
                xp[:, :, hs : hs + stride * oh : stride, ws : ws + stride * ow : stride]
            )  # (N, C, OH, OW)
    patches = jnp.stack(cols, axis=2)                      # (N, C, T, OH, OW), T = KH*KW
    # K ordering = c * (KH*KW) + kh*KW + kw  (matches PyTorch weight.reshape(OUT, -1))
    at = patches.transpose(1, 2, 0, 3, 4).reshape(c * kh * kw, n * oh * ow)
    return at, oh, ow


def _choose_tm(k, out_c):
    """Biggest lane-dense M tile that keeps double-buffered tiles inside the budget."""
    tm = 512

    def tile_bytes(t):
        return (2 * k * t * 2          # double-buffered A^T tile (bf16)
                + 2 * out_c * t * 4    # double-buffered output tile (f32)
                + 2 * out_c * k * 2    # resident folded weights (bf16, double-buffered)
                + 2 * out_c * 4)       # resident bias

    while tm > 128 and tile_bytes(tm) > _VMEM_TILE_BUDGET:
        tm //= 2
    return tm


@functools.partial(jax.jit, static_argnames=("stride", "padding", "dilation"))
def basic_conv2d(x, weight, gamma, beta, running_mean, running_var,
                 stride=1, padding=0, dilation=1, eps=1e-5):
    """Conv2d(bias=False) + BatchNorm2d(eval) + ReLU.  x: NCHW, weight: (OUT, C, KH, KW)."""
    n, c, h, w = x.shape
    out_c, _, kh, kw = weight.shape
    k = c * kh * kw

    # im2col in bf16 (halves the KH*KW HBM blow-up relative to f32).
    at, oh, ow = _im2col_t(x.astype(jnp.bfloat16), kh, kw, stride, padding, dilation)
    m = n * oh * ow

    # Fold BN (inference) into the weights (scale) and a per-channel bias.
    scale = gamma / jnp.sqrt(running_var + eps)                                 # (OUT,)
    wt = (weight.reshape(out_c, k) * scale[:, None]).astype(jnp.bfloat16)       # (OUT, K)
    bias = (beta - running_mean * scale).reshape(out_c, 1).astype(jnp.float32)  # (OUT, 1)

    # Pad OUT to a sublane multiple for dense output stores (no cost when already aligned).
    out_pad = pl.cdiv(out_c, 8) * 8
    if out_pad != out_c:
        wt = jnp.pad(wt, ((0, out_pad - out_c), (0, 0)))
        bias = jnp.pad(bias, ((0, out_pad - out_c), (0, 0)))

    tm = _choose_tm(k, out_pad)
    m_pad = pl.cdiv(m, tm) * tm
    at_p = jnp.pad(at, ((0, 0), (0, m_pad - m))) if m_pad != m else at

    cost = pl.CostEstimate(
        flops=2 * m_pad * k * out_pad,
        transcendentals=0,
        bytes_accessed=k * m_pad * 2 + out_pad * k * 2 + out_pad * m_pad * 4 + out_pad * 4,
    )

    out_t = pl.pallas_call(
        _gemm_bn_relu_kernel,
        out_shape=jax.ShapeDtypeStruct((out_pad, m_pad), jnp.float32),
        grid_spec=pltpu.PrefetchScalarGridSpec(
            num_scalar_prefetch=0,
            grid=(m_pad // tm,),
            in_specs=[
                pl.BlockSpec((out_pad, k), lambda i: (0, 0)),   # folded weights (resident)
                pl.BlockSpec((k, tm), lambda i: (0, i)),        # A^T tile, lane-dense
                pl.BlockSpec((out_pad, 1), lambda i: (0, 0)),   # folded bias (resident)
            ],
            out_specs=pl.BlockSpec((out_pad, tm), lambda i: (0, i)),
        ),
        compiler_params=pltpu.CompilerParams(
            dimension_semantics=("parallel",),                  # shards M tiles across TCs (v7x)
            vmem_limit_bytes=_VMEM_LIMIT_BYTES,
        ),
        cost_estimate=cost,
    )(wt, at_p, bias)

    # (OUTp, Mp) -> (OUT, N, OH, OW) -> (N, OUT, OH, OW): only a leading-axis swap.
    out = out_t[:out_c, :m].reshape(out_c, n, oh, ow).transpose(1, 0, 2, 3)
    return out


def _reference(x, weight, gamma, beta, running_mean, running_var,
               stride, padding, dilation, eps=1e-5):
    y = jax.lax.conv_general_dilated(
        x, weight,
        window_strides=(stride, stride),
        padding=[(padding, padding), (padding, padding)],
        rhs_dilation=(dilation, dilation),
        dimension_numbers=("NCHW", "OIHW", "NCHW"),
        precision=jax.lax.Precision.HIGHEST,
    )
    scale = gamma / jnp.sqrt(running_var + eps)
    y = y * scale[None, :, None, None] + (beta - running_mean * scale)[None, :, None, None]
    return jnp.maximum(y, 0.0)


if __name__ == "__main__":
    key = jax.random.PRNGKey(0)
    k_x, k_w, k_g, k_b, k_m, k_v = jax.random.split(key, 6)

    # Small shapes consistent with BasicConv2d(in_planes=4, out_planes=8, kernel_size=3,
    # stride=1, padding=1).
    N, C_IN, H, W = 2, 4, 16, 16
    C_OUT, KH, KW = 8, 3, 3
    stride, padding, dilation = 1, 1, 1

    x = jax.random.normal(k_x, (N, C_IN, H, W), dtype=jnp.float32)
    weight = jax.random.normal(k_w, (C_OUT, C_IN, KH, KW), dtype=jnp.float32) * 0.1
    gamma = jax.random.uniform(k_g, (C_OUT,), minval=0.5, maxval=1.5, dtype=jnp.float32)
    beta = jax.random.normal(k_b, (C_OUT,), dtype=jnp.float32) * 0.1
    running_mean = jax.random.normal(k_m, (C_OUT,), dtype=jnp.float32) * 0.1
    running_var = jax.random.uniform(k_v, (C_OUT,), minval=0.5, maxval=1.5, dtype=jnp.float32)

    out = basic_conv2d(x, weight, gamma, beta, running_mean, running_var,
                       stride=stride, padding=padding, dilation=dilation)
    out = jax.block_until_ready(out)

    ref = _reference(x, weight, gamma, beta, running_mean, running_var,
                     stride, padding, dilation)
    assert out.shape == (N, C_OUT, H, W)
    # bf16 inputs with f32 accumulation -> looser tolerance vs the f32 HIGHEST reference.
    assert jnp.allclose(out, ref, rtol=2e-2, atol=5e-2), "mismatch vs reference"

    print("KERNEL_OK")
</pallas_src>

<mosaic_0001>
module attributes {stable_mosaic.version = 11 : i64} {
  func.func @_gemm_bn_relu_kernel(%arg0: i32, %arg1: memref<8x36xbf16, #tpu.memory_space<vmem>>, %arg2: memref<36x512xbf16, #tpu.memory_space<vmem>>, %arg3: memref<8x1xf32, #tpu.memory_space<vmem>>, %arg4: memref<8x512xf32, #tpu.memory_space<vmem>>) attributes {dimension_semantics = [#tpu.dimension_semantics<parallel>], iteration_bounds = array<i64: 1>, scalar_prefetch = 0 : i64, scratch_operands = 0 : i64, tpu.core_type = #tpu.core_type<tc>, window_params = [{pipeline_mode = #tpu.pipeline_mode<synchronous>, transform_indices = @transform_0, window_bounds = array<i64: 8, 36>}, {transform_indices = @transform_1, window_bounds = array<i64: 36, 512>}, {pipeline_mode = #tpu.pipeline_mode<synchronous>, transform_indices = @transform_2, window_bounds = array<i64: 8, 1>}, {transform_indices = @transform_3, window_bounds = array<i64: 8, 512>}]} {
    %c0 = arith.constant 0 : index
    %c0_0 = arith.constant 0 : index
    %0 = vector.load %arg1[%c0, %c0_0] : memref<8x36xbf16, #tpu.memory_space<vmem>>, vector<8x36xbf16>
    %c0_1 = arith.constant 0 : index
    %c0_2 = arith.constant 0 : index
    %1 = vector.load %arg2[%c0_1, %c0_2] : memref<36x512xbf16, #tpu.memory_space<vmem>>, vector<36x512xbf16>
    %cst = arith.constant dense<0.000000e+00> : vector<8x512xf32>
    %2 = tpu.matmul %0, %1, %cst {dimension_numbers = #tpu.dot_dimension_numbers<[1], [0], [0], [1], [0, 0, 1, 1], [], []>} : vector<8x36xbf16>, vector<36x512xbf16>, vector<8x512xf32> -> vector<8x512xf32>
    %c0_3 = arith.constant 0 : index
    %c0_4 = arith.constant 0 : index
    %3 = vector.load %arg3[%c0_3, %c0_4] : memref<8x1xf32, #tpu.memory_space<vmem>>, vector<8x1xf32>
    %4 = vector.broadcast %3 : vector<8x1xf32> to vector<8x512xf32>
    %5 = arith.addf %2, %4 : vector<8x512xf32>
    %cst_5 = arith.constant 0.000000e+00 : f32
    %6 = vector.broadcast %cst_5 : f32 to vector<8x512xf32>
    %7 = arith.maximumf %5, %6 : vector<8x512xf32>
    %c0_6 = arith.constant 0 : index
    %c0_7 = arith.constant 0 : index
    %8 = vector.load %arg4[%c0_6, %c0_7] : memref<8x512xf32, #tpu.memory_space<vmem>>, vector<8x512xf32>
    tpu.vector_store %arg4[%c0_6, %c0_7], %7 {strides = array<i32>} : memref<8x512xf32, #tpu.memory_space<vmem>>, vector<8x512xf32>,
    return
  }
  func.func @transform_0(%arg0: i32) -> (i32, i32) {
    %c0_i32 = arith.constant 0 : i32
    %c0_i32_0 = arith.constant 0 : i32
    %c0_i32_1 = arith.constant 0 : i32
    return %c0_i32, %c0_i32_0 : i32, i32
  }
  func.func @transform_1(%arg0: i32) -> (i32, i32) {
    %c0_i32 = arith.constant 0 : i32
    %c0_i32_0 = arith.constant 0 : i32
    return %c0_i32, %arg0 : i32, i32
  }
  func.func @transform_2(%arg0: i32) -> (i32, i32) {
    %c0_i32 = arith.constant 0 : i32
    %c0_i32_0 = arith.constant 0 : i32
    %c0_i32_1 = arith.constant 0 : i32
    return %c0_i32, %c0_i32_0 : i32, i32
  }
  func.func @transform_3(%arg0: i32) -> (i32, i32) {
    %c0_i32 = arith.constant 0 : i32
    %c0_i32_0 = arith.constant 0 : i32
    return %c0_i32, %arg0 : i32, i32
  }
}

</mosaic_0001>

<bundles_post_ra>
// kernel: basic_conv2d.1
= control target key start
LH: loop header
LB: loop body
LE: loop exit
PB: predicated region body
PF: predicated region fallthrough
CT: control target
= control target key end

     0   :  { %v209_v2 = vmov 0   ;;  %vm86_vm0 = vcmask 1041408   ;;  %vm82_vm1 = vcmask 293888   ;;  %s306_s1 = inlined_call_operand.vmem [shape: bf16[36,512], index: 1, kind: input, shape index: {}]   ;;  %s307_s2 = inlined_call_operand.vmem [shape: f32[8,1], index: 2, kind: input, shape index: {}]   ;;  %s308_s0 = inlined_call_operand.vmem [shape: bf16[8,36], index: 0, kind: input, shape index: {}]   ;;  %s309_s3 = inlined_call_operand.vmem [shape: f32[8,512], index: 3, kind: output, shape index: {}]  }
   0x1   :  { %v24_v0 = vld [vmem:[%s306_s1 + $0x40] sm:$0x33]  ;;  %v25_v1 = vld [vmem:[%s306_s1 + $0x48] sm:$0x33]  ;;  %208 = vset.pattern.permute.xlu0 %v209_v2  ;;  %v205_v8 = vld [vmem:[%s306_s1 + $0x2c] sm:$0xf0] }
   0x2   :  { %v58_v3 = vunpack.c.l.b16 %v24_v0  ;;  %v59_v4 = vunpack.c.h.b16 %v24_v0  ;;  %v60_v5 = vunpack.c.l.b16 %v25_v1  ;;  %v61_v6 = vunpack.c.h.b16 %v25_v1  ;;  %v181_v7 = vld [vmem:[%s306_s1 + $0x20] sm:$0xf]  ;;  %v203_v13 = vld [vmem:[%s306_s1 + $0x24] sm:$0xf]  ;;  %v183_v14 = vld [vmem:[%s306_s1 + $0x30] sm:$0xf0] }
   0x3   :  { %v189_v15 = vld [vmem:[%s306_s1 + $0x28] sm:$0xf]  ;;  %v206_v16 = vld [vmem:[%s306_s1 + $0x34] sm:$0xf0]  ;;  %v204_v17 = vld [vmem:[%s306_s1 + $0x2c] sm:$0xf]  ;;  %v182_v23 = vor.u32 %v205_v8, %v181_v7  ;;  %v186_v24 = vor.u32 %v203_v13, %v183_v14 }
   0x4   :  { %v70_v9 = vpack.c.b16 %v58_v3, %v58_v3  ;;  %v71_v10 = vpack.c.b16 %v59_v4, %v59_v4  ;;  %v72_v11 = vpack.c.b16 %v60_v5, %v60_v5  ;;  %v73_v12 = vpack.c.b16 %v61_v6, %v61_v6  ;;  %v191_v18 = vld [vmem:[%s306_s1 + $0x38] sm:$0xf0]  ;;  %v165_v25 = vld [vmem:[%s306_s1] sm:$0xf]  ;;  %v201_v26 = vld [vmem:[%s306_s1 + $0xc] sm:$0xf0] }
   0x5   :  { %v199_v27 = vld [vmem:[%s306_s1 + $0x4] sm:$0xf]  ;;  %v190_v28 = vor.u32 %v206_v16, %v189_v15  ;;  %v194_v29 = vor.u32 %v204_v17, %v191_v18  ;;  %v167_v30 = vld [vmem:[%s306_s1 + $0x10] sm:$0xf0]  ;;  %v173_v31 = vld [vmem:[%s306_s1 + $0x8] sm:$0xf]  ;;  %v166_v36 = vor.u32 %v201_v26, %v165_v25 }
   0x6   :  { %v88_v19 = vsel %vm86_vm0, %v70_v9, 0  ;;  %v91_v20 = vsel %vm86_vm0, %v71_v10, 0  ;;  %v94_v21 = vsel %vm86_vm0, %v72_v11, 0  ;;  %v97_v22 = vsel %vm86_vm0, %v73_v12, 0  ;;  %v26_v32 = vld [vmem:[%s307_s2] sm:$0xff] }
   0x7   :  { %104 = vmatpush.bf16.msra.mxu0 %v88_v19  ;;  %117 = vmatpush.bf16.msra.mxu1 %v91_v20  ;;  %v202_v33 = vld [vmem:[%s306_s1 + $0x14] sm:$0xf0]  ;;  %v200_v34 = vld [vmem:[%s306_s1 + $0xc] sm:$0xf]  ;;  %v175_v35 = vld [vmem:[%s306_s1 + $0x18] sm:$0xf0]  ;;  %v170_v37 = vor.u32 %v199_v27, %v167_v30 }
   0x8   :  { %130 = vmatpush.bf16.msra.mxu2 %v94_v21  ;;  %143 = vmatpush.bf16.msra.mxu3 %v97_v22  ;;  %v174_v38 = vor.u32 %v202_v33, %v173_v31  ;;  %v178_v39 = vor.u32 %v200_v34, %v175_v35  ;;  %v15_v40 = vld [vmem:[%s308_s0] sm:$0xf] }
   0x9   :  { %29 = vperm.xlu0 %208, %v26_v32  }
   0xb   :  { %105 = vmatpush.bf16.msra.mxu0 %v182_v23  ;;  %118 = vmatpush.bf16.msra.mxu1 %v186_v24 }
   0xc   :  { %131 = vmatpush.bf16.msra.mxu2 %v190_v28  ;;  %144 = vmatpush.bf16.msra.mxu3 %v194_v29 }
   0xf   :  { %106 = vmatpush.bf16.msra.mxu0 %v166_v36  ;;  %119 = vmatpush.bf16.msra.mxu1 %v170_v37 }
  0x10   :  { %132 = vmatpush.bf16.msra.mxu2 %v174_v38  ;;  %145 = vmatpush.bf16.msra.mxu3 %v178_v39 }
  0x12   :  { %195 = vmatmul.msk.bf16.vlgmr.msra.gmra.mxu0 %vm82_vm1, %v15_v40  ;;  %196 = vmatmul.msk.bf16.vlgmr.msra.gmra.mxu1 %vm82_vm1, %v15_v40 }
  0x13   :  { %197 = vmatmul.msk.bf16.vlgmr.msra.gmra.mxu2 %vm82_vm1, %v15_v40  ;;  %198 = vmatmul.msk.bf16.vlgmr.msra.gmra.mxu3 %vm82_vm1, %v15_v40 }
  0x7b   :  { %v30_v41 = vpop.permute.xlu0 %29 }
  0x8f   :  { %v108_v42 = vpop.f32.mrf.mxu0  ;;  %v121_v43 = vpop.f32.mrf.mxu1 }
  0x90   :  { %v109_v44 = vadd.f32 %v108_v42, %v30_v41  ;;  %v122_v45 = vadd.f32 %v121_v43, %v30_v41 }
  0x92   :  { %v151_v46 = vmax.f32 %v109_v44, 0.0  ;;  %v152_v47 = vmax.f32 %v122_v45, 0.0 }
  0x94   :  { %155 = vst [vmem:[%s309_s3] sm:$0xff] %v151_v46 }
  0x95   :  { %156 = vst [vmem:[%s309_s3 + $0x8] sm:$0xff] %v152_v47 }
  0x96   :  { %v134_v48 = vpop.f32.mrf.mxu2  ;;  %v147_v49 = vpop.f32.mrf.mxu3 }
  0x97   :  { %v135_v50 = vadd.f32 %v134_v48, %v30_v41  ;;  %v148_v51 = vadd.f32 %v147_v49, %v30_v41  ;;  %v110_v52 = vpop.f32.mrf.mxu0  ;;  %v123_v53 = vpop.f32.mrf.mxu1 }
  0x99   :  { %v153_v54 = vmax.f32 %v135_v50, 0.0  ;;  %v154_v55 = vmax.f32 %v148_v51, 0.0 }
  0x9b   :  { %157 = vst [vmem:[%s309_s3 + $0x10] sm:$0xff] %v153_v54 }
  0x9c   :  { %158 = vst [vmem:[%s309_s3 + $0x18] sm:$0xff] %v154_v55 }
  0x9e   :  { %v136_v56 = vpop.f32.mrf.mxu2  ;;  %v149_v57 = vpop.f32.mrf.mxu3 }

</bundles_post_ra>
